<compile_context>
chip_gen: v7x
topology: tpu7x:2x2x1
jax: 0.10.0
libtpu: 0.0.40
codegen_flags: <defaults>
</compile_context>

<pallas_src>
import functools
import jax
import jax.numpy as jnp
from jax import lax
from jax.experimental import pallas as pl
from jax.experimental.pallas import tpu as pltpu


def _round_up(x, m):
    return (x + m - 1) // m * m


def _conv_sigmoid_kernel(p_ref, w_ref, b_ref, o_ref):
    # p_ref: (K, TM)   im2col patch tile, M lane-dense
    # w_ref: (OC, K)   conv weight as a matrix (replicated across the grid)
    # b_ref: (OC, 1)   bias (replicated)
    # o_ref: (OC, TM)  sigmoid(W @ P + b), lane-dense unmasked stores
    acc = jnp.dot(w_ref[...], p_ref[...], preferred_element_type=jnp.float32)
    acc = acc + b_ref[...]
    # Exact sigmoid: exp goes to the EUP; approx reciprocal is skipped to keep
    # the 1e-5 accuracy vs the f32 reference.
    o_ref[...] = (1.0 / (1.0 + jnp.exp(-acc))).astype(o_ref.dtype)


def _im2col_km(x_nchw, kh, kw, sh, sw):
    """Build patches in (K, M) layout.

    K-order is (c, i, j) (matches weight.reshape(OC, -1)); M-order is
    (n, oh, ow). The final reshape is a free row-major merge.
    """
    N, C, H, W = x_nchw.shape
    OH = (H - kh) // sh + 1
    OW = (W - kw) // sw + 1
    cols = []
    for i in range(kh):
        for j in range(kw):
            cols.append(x_nchw[:, :, i:i + sh * OH:sh, j:j + sw * OW:sw])  # (N,C,OH,OW)
    p = jnp.stack(cols, axis=2)               # (N, C, KH*KW, OH, OW)
    p = jnp.transpose(p, (1, 2, 0, 3, 4))     # (C, KH*KW, N, OH, OW)
    patches = p.reshape(C * kh * kw, N * OH * OW)   # (K, M)
    return patches, OH, OW


@functools.partial(jax.jit, static_argnames=("kernel_size", "stride"))
def discriminator_output_block(x_nchw, weight_oihw, bias, *, kernel_size, stride):
    """Forward pass of DiscriminatorOutputBlock.

    x_nchw:      (N, IC, H, W)      float32
    weight_oihw: (OC, IC, KH, KW)   float32 (PyTorch Conv2d layout)
    bias:        (OC,)              float32
    returns:     (N, OC, OH, OW)    float32, sigmoid(conv2d(x))
    """
    kh = kw = kernel_size
    sh = sw = stride
    N, IC, H, W = x_nchw.shape
    OC = weight_oihw.shape[0]

    patches, OH, OW = _im2col_km(x_nchw, kh, kw, sh, sw)   # (K, M)
    K, M = patches.shape

    # (OC, IC, KH, KW) -> (OC, K) with K-order (c, i, j): a free reshape.
    w_mat = weight_oihw.reshape(OC, K)
    b_col = bias.reshape(OC, 1)

    # Tile over M. TM is a multiple of 128 (lane dim of the patch load and the
    # output store) and a multiple of 256 at real sizes (v7x MXU friendly).
    # Only M is padded (at most TM-1 columns); K and OC stay exact
    # (block dim == full array dim is legal for the (8,128) rule).
    TM = min(1024, _round_up(M, 128))
    Mp = _round_up(M, TM)
    if Mp != M:
        patches = jnp.pad(patches, ((0, 0), (0, Mp - M)))

    out_t = pl.pallas_call(
        _conv_sigmoid_kernel,
        out_shape=jax.ShapeDtypeStruct((OC, Mp), jnp.float32),
        grid=(Mp // TM,),
        in_specs=[
            pl.BlockSpec((K, TM), lambda i: (0, i)),    # patches tile
            pl.BlockSpec((OC, K), lambda i: (0, 0)),    # weight, replicated
            pl.BlockSpec((OC, 1), lambda i: (0, 0)),    # bias, replicated
        ],
        out_specs=pl.BlockSpec((OC, TM), lambda i: (0, i)),
        compiler_params=pltpu.CompilerParams(
            dimension_semantics=("parallel",),          # shard M tiles across TCs
            vmem_limit_bytes=32 * 1024 * 1024),         # safe on v5e/v6e/v7x
    )(patches, w_mat, b_col)

    out = out_t[:, :M].reshape(OC, N, OH, OW)           # (OC, N, OH, OW)
    return jnp.transpose(out, (1, 0, 2, 3))             # (N, OC, OH, OW) = NCHW


def _reference(x_nchw, weight_oihw, bias, kernel_size, stride):
    """Pure-JAX reference (lax conv) for a sanity check."""
    y = lax.conv_general_dilated(
        x_nchw, weight_oihw,
        window_strides=(stride, stride),
        padding="VALID",
        dimension_numbers=("NCHW", "OIHW", "NCHW"),
    )
    y = y + bias[None, :, None, None]
    return jax.nn.sigmoid(y)


if __name__ == "__main__":
    # Module config (small, consistent with a discriminator output head).
    in_channels, out_channels = 4, 8
    kernel_size, stride = 3, 2
    N, H, W = 2, 16, 16

    key = jax.random.PRNGKey(0)
    kx, kw_, kb = jax.random.split(key, 3)

    # Deterministic parameter init (PyTorch-like uniform bound from fan_in).
    fan_in = in_channels * kernel_size * kernel_size
    bound = 1.0 / (fan_in ** 0.5)
    weight = jax.random.uniform(
        kw_, (out_channels, in_channels, kernel_size, kernel_size),
        minval=-bound, maxval=bound, dtype=jnp.float32)
    bias = jax.random.uniform(
        kb, (out_channels,), minval=-bound, maxval=bound, dtype=jnp.float32)

    x = jax.random.normal(kx, (N, in_channels, H, W), dtype=jnp.float32)

    out = discriminator_output_block(
        x, weight, bias, kernel_size=kernel_size, stride=stride)
    out = jax.block_until_ready(out)

    ref = _reference(x, weight, bias, kernel_size, stride)
    assert out.shape == ref.shape, (out.shape, ref.shape)
    assert jnp.allclose(out, ref, atol=1e-5, rtol=1e-5), "mismatch vs reference"

    print("KERNEL_OK")
</pallas_src>

<mosaic_0001>
module attributes {stable_mosaic.version = 11 : i64} {
  func.func @_conv_sigmoid_kernel(%arg0: i32, %arg1: memref<36x128xf32, #tpu.memory_space<vmem>>, %arg2: memref<8x36xf32, #tpu.memory_space<vmem>>, %arg3: memref<8x1xf32, #tpu.memory_space<vmem>>, %arg4: memref<8x128xf32, #tpu.memory_space<vmem>>) attributes {dimension_semantics = [#tpu.dimension_semantics<parallel>], iteration_bounds = array<i64: 1>, scalar_prefetch = 0 : i64, scratch_operands = 0 : i64, tpu.core_type = #tpu.core_type<tc>, window_params = [{transform_indices = @transform_0, window_bounds = array<i64: 36, 128>}, {pipeline_mode = #tpu.pipeline_mode<synchronous>, transform_indices = @transform_1, window_bounds = array<i64: 8, 36>}, {pipeline_mode = #tpu.pipeline_mode<synchronous>, transform_indices = @transform_2, window_bounds = array<i64: 8, 1>}, {transform_indices = @transform_3, window_bounds = array<i64: 8, 128>}]} {
    %c0 = arith.constant 0 : index
    %c0_0 = arith.constant 0 : index
    %0 = vector.load %arg2[%c0, %c0_0] : memref<8x36xf32, #tpu.memory_space<vmem>>, vector<8x36xf32>
    %c0_1 = arith.constant 0 : index
    %c0_2 = arith.constant 0 : index
    %1 = vector.load %arg1[%c0_1, %c0_2] : memref<36x128xf32, #tpu.memory_space<vmem>>, vector<36x128xf32>
    %cst = arith.constant dense<0.000000e+00> : vector<8x128xf32>
    %2 = tpu.matmul %0, %1, %cst {dimension_numbers = #tpu.dot_dimension_numbers<[1], [0], [0], [1], [0, 0, 1, 1], [], []>} : vector<8x36xf32>, vector<36x128xf32>, vector<8x128xf32> -> vector<8x128xf32>
    %c0_3 = arith.constant 0 : index
    %c0_4 = arith.constant 0 : index
    %3 = vector.load %arg3[%c0_3, %c0_4] : memref<8x1xf32, #tpu.memory_space<vmem>>, vector<8x1xf32>
    %4 = vector.broadcast %3 : vector<8x1xf32> to vector<8x128xf32>
    %5 = arith.addf %2, %4 : vector<8x128xf32>
    %cst_5 = arith.constant 0.000000e+00 : f32
    %6 = vector.broadcast %cst_5 : f32 to vector<8x128xf32>
    %7 = arith.subf %6, %5 : vector<8x128xf32>
    %8 = math.exp %7 : vector<8x128xf32>
    %cst_6 = arith.constant 1.000000e+00 : f32
    %9 = vector.broadcast %cst_6 : f32 to vector<8x128xf32>
    %10 = arith.addf %9, %8 : vector<8x128xf32>
    %cst_7 = arith.constant 1.000000e+00 : f32
    %11 = vector.broadcast %cst_7 : f32 to vector<8x128xf32>
    %12 = arith.divf %11, %10 : vector<8x128xf32>
    %c0_8 = arith.constant 0 : index
    %c0_9 = arith.constant 0 : index
    %13 = vector.load %arg4[%c0_8, %c0_9] : memref<8x128xf32, #tpu.memory_space<vmem>>, vector<8x128xf32>
    tpu.vector_store %arg4[%c0_8, %c0_9], %12 {strides = array<i32>} : memref<8x128xf32, #tpu.memory_space<vmem>>, vector<8x128xf32>,
    return
  }
  func.func @transform_0(%arg0: i32) -> (i32, i32) {
    %c0_i32 = arith.constant 0 : i32
    %c0_i32_0 = arith.constant 0 : i32
    return %c0_i32, %arg0 : i32, i32
  }
  func.func @transform_1(%arg0: i32) -> (i32, i32) {
    %c0_i32 = arith.constant 0 : i32
    %c0_i32_0 = arith.constant 0 : i32
    %c0_i32_1 = arith.constant 0 : i32
    return %c0_i32, %c0_i32_0 : i32, i32
  }
  func.func @transform_2(%arg0: i32) -> (i32, i32) {
    %c0_i32 = arith.constant 0 : i32
    %c0_i32_0 = arith.constant 0 : i32
    %c0_i32_1 = arith.constant 0 : i32
    return %c0_i32, %c0_i32_0 : i32, i32
  }
  func.func @transform_3(%arg0: i32) -> (i32, i32) {
    %c0_i32 = arith.constant 0 : i32
    %c0_i32_0 = arith.constant 0 : i32
    return %c0_i32, %arg0 : i32, i32
  }
}

</mosaic_0001>

<bundles_post_ra>
// kernel: discriminator_output_block.1
= control target key start
LH: loop header
LB: loop body
LE: loop exit
PB: predicated region body
PF: predicated region fallthrough
CT: control target
= control target key end

     0   :  { %v151_v0 = vmov 0.0|0.0   ;;  %vm152_vm0 = vmmov 0   ;;  %v153_v4 = vmov 0.0   ;;  %v154_v7 = vmov 0   ;;  %s199_s0 = inlined_call_operand.vmem [shape: f32[36,128], index: 0, kind: input, shape index: {}]   ;;  %s200_s2 = inlined_call_operand.vmem [shape: f32[8,1], index: 2, kind: input, shape index: {}]   ;;  %s201_s1 = inlined_call_operand.vmem [shape: f32[8,36], index: 1, kind: input, shape index: {}]   ;;  %s202_s3 = inlined_call_operand.vmem [shape: f32[8,128], index: 3, kind: output, shape index: {}]  }
   0x1   :  { %136 = vmatprep.subr.bf16.mxu0 %v151_v0  ;;  %v15_v1 = vld [vmem:[%s199_s0] sm:$0xff]  ;;  %v16_v2 = vld [vmem:[%s199_s0 + $0x8] sm:$0xff]  ;;  %v17_v3 = vld [vmem:[%s199_s0 + $0x10] sm:$0xff]  ;;  %133 = vmatprep.mubr.msk.f32.mxu0 %vm152_vm0, %v153_v4  ;;  %vm30_vm1 = vcmask 1043456   ;;  %vm26_vm2 = vcmask 293888  }
   0x2   :  { %v137_v5 = vpack.c.bf16 %v16_v2, %v15_v1  ;;  %v18_v6 = vld [vmem:[%s199_s0 + $0x18] sm:$0xff]  ;;  %146 = vset.pattern.permute.xlu0 %v154_v7  ;;  %v20_v8 = vld [vmem:[%s200_s2] sm:$0xff] }
   0x3   :  { %v140_v9 = vpack.c.bf16 %v18_v6, %v17_v3  ;;  %23 = vperm.xlu0 %146, %v20_v8   ;;  %v19_v10 = vld [vmem:[%s199_s0 + $0x20] sm:$0xf] }
   0x4   :  { %138 = vmatpush3.bf16.msra.mxu0 %v137_v5  ;;  %v14_v11 = vld [vmem:[%s201_s1] sm:$0xff] }
   0x5   :  { %139 = vmatprep.subr.bf16.mxu0 %v151_v0 }
   0x8   :  { %141 = vmatpush3.bf16.msra.mxu0 %v140_v9 }
   0x9   :  { %131 = vmatprep.subr.mxu0 %v153_v4 }
   0xc   :  { %132 = vmatpush3.msk.msra.mxu0 %vm30_vm1, %v19_v10 }
   0xd   :  { %134 = vmatmul.mubr.msk.f32.vlgmr.msra.gmra.mrb[0].mxu0 %vm26_vm2, %v14_v11 }
  0x82   :  { %v24_v12 = vpop.permute.xlu0 %23 }
  0xe0   :  { %v100_v13 = vpop.f32.mrb[0].mxu0 }
  0xe1   :  { %v101_v14 = vadd.f32 %v100_v13, %v24_v12  ;;  %v135_v15 = vpop.f32.mrb[1].mxu0 }
  0xe3   :  { %v104_v16 = vsub.f32 0.0, %v101_v14 }
  0xe5   :  { %v105_v17 = vmul.f32 1.442695, %v104_v16 }
  0xe7   :  { %147 = vpow2.f32 %v105_v17 }
  0xf1   :  { %v148_v18 = vpop.eup %147 }
  0xf2   :  { %v107_v19 = vadd.f32 1.0, %v148_v18 }
  0xf4   :  { %149 = vrcp.f32 %v107_v19 }
  0xfe   :  { %v150_v20 = vpop.eup %149 }
  0xff   :  { %110 = vst [vmem:[%s202_s3] sm:$0xff] %v150_v20 }

</bundles_post_ra>
